<compile_context>
chip_gen: v5e
topology: v5e:2x2
jax: 0.10.0
libtpu: 0.0.40
codegen_flags: <defaults>
</compile_context>

<pallas_src>
import functools
import math

import jax
import jax.numpy as jnp
import numpy as np
from jax.experimental import pallas as pl
from jax.experimental.pallas import tpu as pltpu


# ----------------------------------------------------------------------------- kernel
def _pfn_kernel(x_ref, w_ref, scale_ref, shift_ref, out_ref, *,
                n_points, compute_dtype, last_layer):
    """One pillar tile: rows are (pillars_per_tile * n_points), pillar-major.

    x_ref    : (TM, C_in)          TM = pillars_per_tile * n_points
    w_ref    : (C_in, C_out)
    scale_ref: (1, C_out)          folded BN scale (or ones)
    shift_ref: (1, C_out)          folded BN shift (or linear bias)
    out_ref  : (bp, N, 2*C_out)    if not last_layer
               (bp, C_out)         if last_layer (dense 2-D store)
    """
    x = x_ref[...]
    w = w_ref[...]

    # Linear: MXU matmul, f32 accumulation (operands f32 by default, bf16 opt-in).
    y = jnp.dot(x.astype(compute_dtype), w.astype(compute_dtype),
                preferred_element_type=jnp.float32)

    # Folded inference BatchNorm (or identity/bias) + ReLU, f32 on the VPU.
    y = y * scale_ref[...] + shift_ref[...]
    y = jnp.maximum(y, 0.0)

    tm, c_out = y.shape
    bp = tm // n_points
    # NOTE: free sublane regrouping when n_points % 8 == 0; still correct (but
    # with extra VMEM copies) otherwise.
    y3 = y.reshape(bp, n_points, c_out)

    if last_layer:
        # Dense (bp, C_out) store — no 1-wide sublane masking.
        out_ref[...] = jnp.max(y3, axis=1).astype(out_ref.dtype)
    else:
        x_max = jnp.max(y3, axis=1, keepdims=True)           # per-pillar max
        x_rep = jnp.broadcast_to(x_max, (bp, n_points, c_out))
        # Single lane-dense store of the concatenated (…, 2*C_out) block.
        out_ref[...] = jnp.concatenate([y3, x_rep], axis=-1).astype(out_ref.dtype)


# ----------------------------------------------------------------------------- tiling heuristic
def _round_up(x, m):
    return -(-x // m) * m


def _vmem_capacity_bytes():
    try:
        return int(pltpu.get_tpu_info().vmem_capacity_bytes)
    except Exception:
        return 64 << 20  # conservative default (v7x per-core VMEM)


def _choose_tile(B, N, C_in, C_out_store_per_pillar_elems, per_pillar_in_bytes,
                 per_pillar_out_bytes, w_bytes, last_layer, N_align):
    """Pick pillars_per_tile (bp) and an explicit vmem_limit_bytes."""
    # Alignment so TM = bp*N % 8 == 0; last_layer's 2-D out block also needs bp % 8.
    a = 8 if last_layer else (8 // math.gcd(N, 8))

    vmem_phys = _vmem_capacity_bytes()
    big_vmem = vmem_phys >= (100 << 20)                 # v5e / v6e (128 MiB) vs v7x (64 MiB)
    out_block_target = (16 << 20) if big_vmem else (8 << 20)
    out_block_floor = 1 << 20
    slack = 2 << 20
    vmem_limit_cap = min(vmem_phys - (16 << 20), (100 << 20) if big_vmem else (44 << 20))

    bp_target = max(1, out_block_target // per_pillar_out_bytes)
    bp_floor = max(1, out_block_floor // per_pillar_out_bytes)
    bp_grid8 = -(-B // 8)                               # keep >= ~8 grid steps when B is big
    bp_budget = max(1, (vmem_limit_cap - w_bytes - slack)
                    // (2 * (per_pillar_in_bytes + per_pillar_out_bytes)))

    bp = min(bp_target, max(bp_floor, bp_grid8), bp_budget)
    bp = max(a, (bp // a) * a)
    bp = min(bp, _round_up(B, a))

    used = 2 * bp * (per_pillar_in_bytes + per_pillar_out_bytes) + w_bytes + slack
    vmem_limit = int(min(vmem_limit_cap, max(32 << 20, used + (8 << 20))))
    return int(bp), vmem_limit


def _validate_bp(bp, B, N, last_layer):
    if (bp * N) % 8 != 0 and bp * N != B * N:
        raise ValueError(f"pillars_per_tile * N must be a multiple of 8, got {bp}*{N}")
    if last_layer and bp % 8 != 0 and bp != B:
        raise ValueError("last_layer requires pillars_per_tile % 8 == 0 (or == num pillars)")


# ----------------------------------------------------------------------------- wrapper
def pfn_layer_forward(inputs, params, *, use_norm=True, last_layer=False,
                      pillars_per_tile=None, compute_dtype=jnp.float32,
                      out_dtype=jnp.float32, eps=1e-3):
    """PFNLayer forward.  inputs: (B, N, C_in) float32.

    params["weight"] is stored as (C_in, C_out_eff) (i.e. nn.Linear.weight.T with
    C_out_eff = out_channels // 2 when not last_layer, matching __init__).
    out_dtype=jnp.bfloat16 is an opt-in that halves the dominant output stream.
    """
    B, N, C_in = inputs.shape
    W = params["weight"]
    C_out = W.shape[1]

    # Fold BatchNorm1d (eval mode) into a per-channel affine; use_norm=False
    # reuses the same path with scale=1, shift=bias.
    if use_norm:
        scale = params["gamma"] * jax.lax.rsqrt(params["running_var"] + eps)
        shift = params["beta"] - params["running_mean"] * scale
    else:
        scale = jnp.ones((C_out,), jnp.float32)
        shift = params["bias"]
    scale = scale.reshape(1, C_out).astype(jnp.float32)
    shift = shift.reshape(1, C_out).astype(jnp.float32)

    in_itemsize = jnp.dtype(inputs.dtype).itemsize
    out_itemsize = jnp.dtype(out_dtype).itemsize
    per_pillar_in = N * C_in * in_itemsize
    per_pillar_out = (C_out if last_layer else N * 2 * C_out) * out_itemsize
    w_bytes = C_in * C_out * jnp.dtype(W.dtype).itemsize

    if pillars_per_tile is None:
        bp, vmem_limit = _choose_tile(B, N, C_in, C_out, per_pillar_in,
                                      per_pillar_out, w_bytes, last_layer, 8)
    else:
        bp = int(pillars_per_tile)
        used = 2 * bp * (per_pillar_in + per_pillar_out) + w_bytes + (2 << 20)
        vmem_limit = int(max(32 << 20, used + (8 << 20)))
    _validate_bp(bp, B, N, last_layer)

    TM = bp * N
    grid = (-(-B // bp),)                       # ragged last tile handled by Pallas masking

    # Pre-cast the (resident) weight once if a narrower compute dtype is requested.
    W_in = W if jnp.dtype(W.dtype) == jnp.dtype(compute_dtype) else W.astype(compute_dtype)

    # Pillar-major row layout; contiguous reshape is free in XLA (no copy).
    x2 = inputs.reshape(B * N, C_in)

    if last_layer:
        out_shape = jax.ShapeDtypeStruct((B, C_out), out_dtype)
        out_spec = pl.BlockSpec((bp, C_out), lambda i: (i, 0))
        out_elem_bytes = B * C_out * out_itemsize
    else:
        out_shape = jax.ShapeDtypeStruct((B, N, 2 * C_out), out_dtype)
        out_spec = pl.BlockSpec((bp, N, 2 * C_out), lambda i: (i, 0, 0))
        out_elem_bytes = B * N * 2 * C_out * out_itemsize

    in_specs = [
        pl.BlockSpec((TM, C_in), lambda i: (i, 0)),       # activations: tiled over rows
        pl.BlockSpec((C_in, C_out), lambda i: (0, 0)),    # weight: resident
        pl.BlockSpec((1, C_out), lambda i: (0, 0)),       # folded scale
        pl.BlockSpec((1, C_out), lambda i: (0, 0)),       # folded shift
    ]

    cost = pl.CostEstimate(
        flops=2 * B * N * C_in * C_out + 4 * B * N * C_out,
        transcendentals=0,
        bytes_accessed=(B * N * C_in * in_itemsize + w_bytes
                        + 8 * C_out + out_elem_bytes),
    )

    kernel = functools.partial(
        _pfn_kernel, n_points=N, compute_dtype=compute_dtype, last_layer=last_layer)

    out = pl.pallas_call(
        kernel,
        out_shape=out_shape,
        grid=grid,
        in_specs=in_specs,
        out_specs=out_spec,
        compiler_params=pltpu.CompilerParams(
            dimension_semantics=("parallel",),
            vmem_limit_bytes=vmem_limit),
        cost_estimate=cost,
    )(x2, W_in, scale, shift)

    if last_layer:
        return out.reshape(B, 1, C_out)        # free reshape, matches torch keepdim=True
    return out


# ----------------------------------------------------------------------------- params / reference
def make_pfn_params(key, in_channels, out_channels, *, use_norm=True, last_layer=False):
    c_out = out_channels if last_layer else out_channels // 2
    ks = jax.random.split(key, 5)
    p = {"weight": jax.random.normal(ks[0], (in_channels, c_out), jnp.float32) * 0.1}
    if use_norm:
        p["gamma"] = jax.random.uniform(ks[1], (c_out,), jnp.float32, 0.5, 1.5)
        p["beta"] = jax.random.normal(ks[2], (c_out,), jnp.float32) * 0.1
        p["running_mean"] = jax.random.normal(ks[3], (c_out,), jnp.float32) * 0.1
        p["running_var"] = jax.random.uniform(ks[4], (c_out,), jnp.float32, 0.5, 1.5)
    else:
        p["bias"] = jax.random.normal(ks[1], (c_out,), jnp.float32) * 0.1
    return p


def pfn_reference(inputs, params, *, use_norm=True, last_layer=False, eps=1e-3):
    """Pure-JAX f32 reference mirroring the PyTorch module (eval-mode BN)."""
    x = jnp.dot(inputs, params["weight"], preferred_element_type=jnp.float32)
    if use_norm:
        x = (x - params["running_mean"]) * jax.lax.rsqrt(params["running_var"] + eps)
        x = x * params["gamma"] + params["beta"]
    else:
        x = x + params["bias"]
    x = jnp.maximum(x, 0.0)
    x_max = jnp.max(x, axis=1, keepdims=True)
    if last_layer:
        return x_max
    return jnp.concatenate([x, jnp.broadcast_to(x_max, x.shape)], axis=-1)


# ----------------------------------------------------------------------------- demo / test
if __name__ == "__main__":
    key = jax.random.PRNGKey(0)
    kx, kp1, kp2, kp3 = jax.random.split(key, 4)

    # (num_pillars, points_per_pillar, point features); out_channels=128 ->
    # linear to 64, concatenated output channel dim = 128 (lane-dense).
    B, N, C_in = 8, 32, 10
    OUT_CHANNELS = 128

    inputs = jax.random.normal(kx, (B, N, C_in), jnp.float32)

    configs = [
        dict(use_norm=True, last_layer=False),
        dict(use_norm=True, last_layer=True),
        dict(use_norm=False, last_layer=False),
    ]
    for cfg, kp in zip(configs, [kp1, kp2, kp3]):
        params = make_pfn_params(kp, C_in, OUT_CHANNELS, **cfg)
        out = pfn_layer_forward(inputs, params, **cfg)           # auto tile heuristic
        out = jax.block_until_ready(out)
        ref = pfn_reference(inputs, params, **cfg)
        np.testing.assert_allclose(np.asarray(out), np.asarray(ref),
                                   rtol=1e-3, atol=1e-3)

    # Extra: ragged grid (bp does not divide B) exercises masked edge blocks
    # with no host-side padding copy.
    params = make_pfn_params(kp1, C_in, OUT_CHANNELS, use_norm=True, last_layer=False)
    out = pfn_layer_forward(inputs, params, use_norm=True, last_layer=False,
                            pillars_per_tile=3)
    out = jax.block_until_ready(out)
    ref = pfn_reference(inputs, params, use_norm=True, last_layer=False)
    np.testing.assert_allclose(np.asarray(out), np.asarray(ref), rtol=1e-3, atol=1e-3)

    print("KERNEL_OK")
</pallas_src>

<mosaic_0001>
module attributes {stable_mosaic.version = 11 : i64} {
  func.func @_pfn_kernel(%arg0: i32, %arg1: memref<256x10xf32, #tpu.memory_space<vmem>>, %arg2: memref<10x64xf32, #tpu.memory_space<vmem>>, %arg3: memref<1x64xf32, #tpu.memory_space<vmem>>, %arg4: memref<1x64xf32, #tpu.memory_space<vmem>>, %arg5: memref<8x32x128xf32, #tpu.memory_space<vmem>>) attributes {dimension_semantics = [#tpu.dimension_semantics<parallel>], iteration_bounds = array<i64: 1>, scalar_prefetch = 0 : i64, scratch_operands = 0 : i64, tpu.core_type = #tpu.core_type<tc>, window_params = [{transform_indices = @transform_0, window_bounds = array<i64: 256, 10>}, {pipeline_mode = #tpu.pipeline_mode<synchronous>, transform_indices = @transform_1, window_bounds = array<i64: 10, 64>}, {pipeline_mode = #tpu.pipeline_mode<synchronous>, transform_indices = @transform_2, window_bounds = array<i64: 1, 64>}, {pipeline_mode = #tpu.pipeline_mode<synchronous>, transform_indices = @transform_3, window_bounds = array<i64: 1, 64>}, {transform_indices = @transform_4, window_bounds = array<i64: 8, 32, 128>}]} {
    %c0 = arith.constant 0 : index
    %c0_0 = arith.constant 0 : index
    %0 = vector.load %arg1[%c0, %c0_0] : memref<256x10xf32, #tpu.memory_space<vmem>>, vector<256x10xf32>
    %c0_1 = arith.constant 0 : index
    %c0_2 = arith.constant 0 : index
    %1 = vector.load %arg2[%c0_1, %c0_2] : memref<10x64xf32, #tpu.memory_space<vmem>>, vector<10x64xf32>
    %cst = arith.constant dense<0.000000e+00> : vector<256x64xf32>
    %2 = tpu.matmul %0, %1, %cst {dimension_numbers = #tpu.dot_dimension_numbers<[1], [0], [0], [1], [0, 0, 1, 1], [], []>} : vector<256x10xf32>, vector<10x64xf32>, vector<256x64xf32> -> vector<256x64xf32>
    %c0_3 = arith.constant 0 : index
    %c0_4 = arith.constant 0 : index
    %3 = vector.load %arg3[%c0_3, %c0_4] : memref<1x64xf32, #tpu.memory_space<vmem>>, vector<1x64xf32>
    %4 = vector.broadcast %3 : vector<1x64xf32> to vector<256x64xf32>
    %5 = arith.mulf %2, %4 : vector<256x64xf32>
    %c0_5 = arith.constant 0 : index
    %c0_6 = arith.constant 0 : index
    %6 = vector.load %arg4[%c0_5, %c0_6] : memref<1x64xf32, #tpu.memory_space<vmem>>, vector<1x64xf32>
    %7 = vector.broadcast %6 : vector<1x64xf32> to vector<256x64xf32>
    %8 = arith.addf %5, %7 : vector<256x64xf32>
    %cst_7 = arith.constant 0.000000e+00 : f32
    %9 = vector.broadcast %cst_7 : f32 to vector<256x64xf32>
    %10 = arith.maximumf %8, %9 : vector<256x64xf32>
    %11 = vector.shape_cast %10 : vector<256x64xf32> to vector<8x32x64xf32>
    %cst_8 = arith.constant dense<0xFF800000> : vector<8x64xf32>
    %12 = vector.multi_reduction <maximumf>, %11, %cst_8 [1] : vector<8x32x64xf32> to vector<8x64xf32>
    %13 = vector.shape_cast %12 : vector<8x64xf32> to vector<8x1x64xf32>
    %14 = vector.shape_cast %13 : vector<8x1x64xf32> to vector<8x1x64xf32>
    %15 = vector.broadcast %14 : vector<8x1x64xf32> to vector<8x32x64xf32>
    %16 = tpu.concatenate %11, %15 in 2 : vector<8x32x64xf32>, vector<8x32x64xf32> -> vector<8x32x128xf32>
    %c0_9 = arith.constant 0 : index
    %c0_10 = arith.constant 0 : index
    %c0_11 = arith.constant 0 : index
    %17 = vector.load %arg5[%c0_9, %c0_10, %c0_11] : memref<8x32x128xf32, #tpu.memory_space<vmem>>, vector<8x32x128xf32>
    tpu.vector_store %arg5[%c0_9, %c0_10, %c0_11], %16 {strides = array<i32>} : memref<8x32x128xf32, #tpu.memory_space<vmem>>, vector<8x32x128xf32>,
    return
  }
  func.func @transform_0(%arg0: i32) -> (i32, i32) {
    %c0_i32 = arith.constant 0 : i32
    %c0_i32_0 = arith.constant 0 : i32
    return %arg0, %c0_i32 : i32, i32
  }
  func.func @transform_1(%arg0: i32) -> (i32, i32) {
    %c0_i32 = arith.constant 0 : i32
    %c0_i32_0 = arith.constant 0 : i32
    %c0_i32_1 = arith.constant 0 : i32
    return %c0_i32, %c0_i32_0 : i32, i32
  }
  func.func @transform_2(%arg0: i32) -> (i32, i32) {
    %c0_i32 = arith.constant 0 : i32
    %c0_i32_0 = arith.constant 0 : i32
    %c0_i32_1 = arith.constant 0 : i32
    return %c0_i32, %c0_i32_0 : i32, i32
  }
  func.func @transform_3(%arg0: i32) -> (i32, i32) {
    %c0_i32 = arith.constant 0 : i32
    %c0_i32_0 = arith.constant 0 : i32
    %c0_i32_1 = arith.constant 0 : i32
    return %c0_i32, %c0_i32_0 : i32, i32
  }
  func.func @transform_4(%arg0: i32) -> (i32, i32, i32) {
    %c0_i32 = arith.constant 0 : i32
    %c0_i32_0 = arith.constant 0 : i32
    %c0_i32_1 = arith.constant 0 : i32
    return %arg0, %c0_i32, %c0_i32_0 : i32, i32, i32
  }
}

</mosaic_0001>

<bundles_post_ra>
// kernel: tpu_custom_call.1
= control target key start
LH: loop header
LB: loop body
LE: loop exit
PB: predicated region body
PF: predicated region fallthrough
CT: control target
= control target key end

     0   :  { %vm149_vm0 = vcmask 1041408   ;;  %vm52_vm1 = vcmask 80896   ;;  %s1199_s0 = inlined_call_operand.vmem [shape: f32[256,10], index: 0, kind: input, shape index: {}]   ;;  %s1200_s1 = inlined_call_operand.vmem [shape: f32[10,64], index: 1, kind: input, shape index: {}]   ;;  %s1201_s2 = inlined_call_operand.vmem [shape: f32[1,64], index: 2, kind: input, shape index: {}]   ;;  %s1202_s3 = inlined_call_operand.vmem [shape: f32[1,64], index: 3, kind: input, shape index: {}]   ;;  %s1203_s4 = inlined_call_operand.hbm [shape: f32[8,32,128], index: 4, kind: output, shape index: {}]  }
   0x1   :  { %v51_v0 = vld [vmem:[%s1200_s1 + $0x8] sm:$0x3]  ;;  %v50_v1 = vld [vmem:[%s1200_s1] sm:$0xff] }
   0x2   :  { %589 = vmatpush.msk.msra.mxu0 %vm149_vm0, %v51_v0  ;;  %622 = vmatpush.msk.msra.mxu1 %vm149_vm0, %v51_v0  ;;  %v18_v2 = vld [vmem:[%s1199_s0] sm:$0xff] }
   0x3   :  { %623 = vmatpush.msk.msra.mxu2 %vm149_vm0, %v51_v0  ;;  %624 = vmatpush.msk.msra.mxu3 %vm149_vm0, %v51_v0  ;;  %v26_v3 = vld [vmem:[%s1199_s0 + $0x40] sm:$0xff] }
   0x4   :  { %168 = vmatpush.msra.mxu0 %v50_v1  ;;  %625 = vmatpush.msra.mxu1 %v50_v1  ;;  %v34_v4 = vld [vmem:[%s1199_s0 + $0x80] sm:$0xff] }
   0x5   :  { %v42_v5 = vld [vmem:[%s1199_s0 + $0xc0] sm:$0xff]  ;;  %626 = vmatpush.msra.mxu2 %v50_v1  ;;  %627 = vmatpush.msra.mxu3 %v50_v1 }
   0x6   :  { %590 = vmatmul.msk.f32.vlgmr.msra.gmra.mxu0 %vm52_vm1, %v18_v2  ;;  %598 = vmatmul.msk.f32.vlgmr.msra.gmra.mxu1 %vm52_vm1, %v26_v3 }
   0x7   :  { %606 = vmatmul.msk.f32.vlgmr.msra.gmra.mxu2 %vm52_vm1, %v34_v4  ;;  %614 = vmatmul.msk.f32.vlgmr.msra.gmra.mxu3 %vm52_vm1, %v42_v5 }
   0x8   :  { %9 = vsyncpa [#allocation3], 0  ;;  %v19_v6 = vld [vmem:[%s1199_s0 + $0x8] sm:$0xff]  ;;  %v20_v10 = vld [vmem:[%s1199_s0 + $0x10] sm:$0xff]  ;;  %vm370_vm2 = vcmask 523264   ;;  %s577_s8 = sshll.u32 %s1203_s4, 4  ;;  %s578_s8 = int_to_ptr.hbm [resolvable:$true] %s577_s8 }
   0x9   :  { %v27_v7 = vld [vmem:[%s1199_s0 + $0x48] sm:$0xff]  ;;  %v28_v11 = vld [vmem:[%s1199_s0 + $0x50] sm:$0xff]  ;;  %v21_v14 = vld [vmem:[%s1199_s0 + $0x18] sm:$0xff]  ;;  %s662_s4 = smov 128   ;;  %s663_s9 = smov 8  }
   0xa   :  { %v35_v8 = vld [vmem:[%s1199_s0 + $0x88] sm:$0xff]  ;;  %v36_v12 = vld [vmem:[%s1199_s0 + $0x90] sm:$0xff]  ;;  %v29_v15 = vld [vmem:[%s1199_s0 + $0x58] sm:$0xff] }
   0xb   :  { %v43_v9 = vld [vmem:[%s1199_s0 + $0xc8] sm:$0xff]  ;;  %v44_v13 = vld [vmem:[%s1199_s0 + $0xd0] sm:$0xff]  ;;  %v37_v16 = vld [vmem:[%s1199_s0 + $0x98] sm:$0xff] }
   0xc   :  { %v45_v17 = vld [vmem:[%s1199_s0 + $0xd8] sm:$0xff]  ;;  %v22_v18 = vld [vmem:[%s1199_s0 + $0x20] sm:$0xff]  ;;  %v23_v22 = vld [vmem:[%s1199_s0 + $0x28] sm:$0xff] }
   0xd   :  { %v30_v19 = vld [vmem:[%s1199_s0 + $0x60] sm:$0xff]  ;;  %v31_v23 = vld [vmem:[%s1199_s0 + $0x68] sm:$0xff]  ;;  %v24_v26 = vld [vmem:[%s1199_s0 + $0x30] sm:$0xff] }
   0xe   :  { %591 = vmatmul.msk.f32.gmra.mxu0 %vm52_vm1, %v19_v6  ;;  %599 = vmatmul.msk.f32.gmra.mxu1 %vm52_vm1, %v27_v7  ;;  %v38_v20 = vld [vmem:[%s1199_s0 + $0xa0] sm:$0xff]  ;;  %v39_v24 = vld [vmem:[%s1199_s0 + $0xa8] sm:$0xff]  ;;  %v32_v27 = vld [vmem:[%s1199_s0 + $0x70] sm:$0xff] }
   0xf   :  { %607 = vmatmul.msk.f32.gmra.mxu2 %vm52_vm1, %v35_v8  ;;  %615 = vmatmul.msk.f32.gmra.mxu3 %vm52_vm1, %v43_v9  ;;  %v46_v21 = vld [vmem:[%s1199_s0 + $0xe0] sm:$0xff]  ;;  %v47_v25 = vld [vmem:[%s1199_s0 + $0xe8] sm:$0xff]  ;;  %v40_v28 = vld [vmem:[%s1199_s0 + $0xb0] sm:$0xff] }
  0x10   :  { %v48_v29 = vld [vmem:[%s1199_s0 + $0xf0] sm:$0xff]  ;;  %v25_v30 = vld [vmem:[%s1199_s0 + $0x38] sm:$0xff]  ;;  %v828_v40 = vld [vmem:[%s1201_s2] ss:$0 sm:$0xff]  ;;  %s660_s2 = smov 64  }
  0x11   :  { %v33_v31 = vld [vmem:[%s1199_s0 + $0x78] sm:$0xff]  ;;  %v836_v44 = vld [vmem:[%s1202_s3] ss:$0 sm:$0xff]  ;;  %s661_s3 = smov [#allocation2]  }
  0x12   :  { %v41_v32 = vld [vmem:[%s1199_s0 + $0xb8] sm:$0xff]  ;;  %s575_s5 = sshll.u32 %s661_s3, 4  ;;  %s576_s5 = int_to_ptr.vmem [resolvable:$true] %s575_s5 }
  0x13   :  { %v49_v33 = vld [vmem:[%s1199_s0 + $0xf8] sm:$0xff] }
  0x16   :  { %592 = vmatmul.msk.f32.gmra.mxu0 %vm52_vm1, %v20_v10  ;;  %600 = vmatmul.msk.f32.gmra.mxu1 %vm52_vm1, %v28_v11 }
  0x17   :  { %608 = vmatmul.msk.f32.gmra.mxu2 %vm52_vm1, %v36_v12  ;;  %616 = vmatmul.msk.f32.gmra.mxu3 %vm52_vm1, %v44_v13 }
  0x1e   :  { %593 = vmatmul.msk.f32.gmra.mxu0 %vm52_vm1, %v21_v14  ;;  %601 = vmatmul.msk.f32.gmra.mxu1 %vm52_vm1, %v29_v15 }
  0x1f   :  { %609 = vmatmul.msk.f32.gmra.mxu2 %vm52_vm1, %v37_v16  ;;  %617 = vmatmul.msk.f32.gmra.mxu3 %vm52_vm1, %v45_v17 }
  0x26   :  { %594 = vmatmul.msk.f32.gmra.mxu0 %vm52_vm1, %v22_v18  ;;  %602 = vmatmul.msk.f32.gmra.mxu1 %vm52_vm1, %v30_v19 }
  0x27   :  { %610 = vmatmul.msk.f32.gmra.mxu2 %vm52_vm1, %v38_v20  ;;  %618 = vmatmul.msk.f32.gmra.mxu3 %vm52_vm1, %v46_v21 }
  0x2e   :  { %595 = vmatmul.msk.f32.gmra.mxu0 %vm52_vm1, %v23_v22  ;;  %603 = vmatmul.msk.f32.gmra.mxu1 %vm52_vm1, %v31_v23 }
  0x2f   :  { %611 = vmatmul.msk.f32.gmra.mxu2 %vm52_vm1, %v39_v24  ;;  %619 = vmatmul.msk.f32.gmra.mxu3 %vm52_vm1, %v47_v25 }
  0x36   :  { %596 = vmatmul.msk.f32.gmra.mxu0 %vm52_vm1, %v24_v26  ;;  %604 = vmatmul.msk.f32.gmra.mxu1 %vm52_vm1, %v32_v27 }
  0x37   :  { %612 = vmatmul.msk.f32.gmra.mxu2 %vm52_vm1, %v40_v28  ;;  %620 = vmatmul.msk.f32.gmra.mxu3 %vm52_vm1, %v48_v29 }
  0x3e   :  { %597 = vmatmul.msk.f32.gmra.mxu0 %vm52_vm1, %v25_v30  ;;  %605 = vmatmul.msk.f32.gmra.mxu1 %vm52_vm1, %v33_v31 }
  0x3f   :  { %613 = vmatmul.msk.f32.gmra.mxu2 %vm52_vm1, %v41_v32  ;;  %621 = vmatmul.msk.f32.gmra.mxu3 %vm52_vm1, %v49_v33 }
  0x83   :  { %v170_v34 = vpop.f32.mrf.mxu0  ;;  %v194_v35 = vpop.f32.mrf.mxu1 }
  0x84   :  { %v270_v43 = vmul.f32 %v828_v40, %v170_v34  ;;  %v278_v45 = vmul.f32 %v828_v40, %v194_v35 }
  0x86   :  { %v850_v56 = vadd.f32 %v836_v44, %v270_v43  ;;  %v853_v57 = vadd.f32 %v836_v44, %v278_v45 }
  0x88   :  { %v1219_v0 = vmax.f32 %v850_v56, 0.0  ;;  %v346_v1 = vmax.f32 %v853_v57, 0.0 }
  0x8a   :  { %v218_v36 = vpop.f32.mrf.mxu2  ;;  %v823_v37 = vpop.f32.mrf.mxu3  ;;  %v371_v15 = vsel %vm370_vm2, %v1219_v0, -inf  ;;  %v397_v16 = vsel %vm370_vm2, %v346_v1, -inf }
  0x8b   :  { %v173_v38 = vpop.f32.mrf.mxu0  ;;  %v197_v39 = vpop.f32.mrf.mxu1  ;;  %v286_v46 = vmul.f32 %v828_v40, %v218_v36 }
  0x8c   :  { %v271_v41 = vmul.f32 %v828_v40, %v173_v38  ;;  %v279_v42 = vmul.f32 %v828_v40, %v197_v39 }
  0x8d   :  { %v856_v58 = vadd.f32 %v836_v44, %v286_v46 }
  0x8e   :  { %v842_v52 = vadd.f32 %v836_v44, %v271_v41  ;;  %v845_v53 = vadd.f32 %v836_v44, %v279_v42 }
  0x8f   :  { %v354_v2 = vmax.f32 %v856_v58, 0.0 }
  0x90   :  { %v1218_v62 = vmax.f32 %v842_v52, 0.0  ;;  %v347_v63 = vmax.f32 %v845_v53, 0.0 }
  0x91   :  { %v423_v17 = vsel %vm370_vm2, %v354_v2, -inf }
  0x92   :  { %v221_v47 = vpop.f32.mrf.mxu2  ;;  %v245_v48 = vpop.f32.mrf.mxu3  ;;  %v372_v11 = vsel %vm370_vm2, %v1218_v62, -inf  ;;  %v398_v12 = vsel %vm370_vm2, %v347_v63, -inf }
  0x93   :  { %v287_v49 = vmul.f32 %v828_v40, %v221_v47  ;;  %v176_v50 = vpop.f32.mrf.mxu0  ;;  %v200_v51 = vpop.f32.mrf.mxu1  ;;  %v373_v23 = vmax.f32 %v371_v15, %v372_v11  ;;  %v399_v24 = vmax.f32 %v397_v16, %v398_v12  ;;  %v295_v45 = vmul.f32 %v828_v40, %v245_v48 }
  0x94   :  { %v272_v54 = vmul.f32 %v828_v40, %v176_v50  ;;  %v280_v55 = vmul.f32 %v828_v40, %v200_v51  ;;  %v294_v50 = vmul.f32 %v828_v40, %v823_v37 }
  0x95   :  { %v865_v61 = vadd.f32 %v836_v44, %v287_v49 }
  0x96   :  { %v859_v59 = vadd.f32 %v836_v44, %v272_v54  ;;  %v862_v60 = vadd.f32 %v836_v44, %v280_v55  ;;  %v939_v12 = vadd.f32 %v836_v44, %v294_v50 }
  0x97   :  { %v355_v7 = vmax.f32 %v865_v61, 0.0 }
  0x98   :  { %v1217_v3 = vmax.f32 %v859_v59, 0.0  ;;  %v1228_v4 = vmax.f32 %v862_v60, 0.0 }
  0x99   :  { %v424_v25 = vsel %vm370_vm2, %v355_v7, -inf }
  0x9a   :  { %v224_v5 = vpop.f32.mrf.mxu2  ;;  %v248_v6 = vpop.f32.mrf.mxu3  ;;  %v374_v19 = vsel %vm370_vm2, %v1217_v3, -inf  ;;  %v400_v20 = vsel %vm370_vm2, %v1228_v4, -inf  ;;  %v425_v31 = vmax.f32 %v423_v17, %v424_v25 }
  0x9b   :  { %v288_v8 = vmul.f32 %v828_v40, %v224_v5  ;;  %v179_v9 = vpop.f32.mrf.mxu0  ;;  %v203_v10 = vpop.f32.mrf.mxu1  ;;  %v375_v29 = vmax.f32 %v373_v23, %v374_v19  ;;  %v401_v30 = vmax.f32 %v399_v24, %v400_v20  ;;  %v296_v54 = vmul.f32 %v828_v40, %v248_v6 }
  0x9c   :  { %v273_v13 = vmul.f32 %v828_v40, %v179_v9  ;;  %v281_v14 = vmul.f32 %v828_v40, %v203_v10  ;;  %v933_v9 = vadd.f32 %v836_v44, %v295_v45 }
  0x9d   :  { %v894_v18 = vadd.f32 %v836_v44, %v288_v8  ;;  %v943_v15 = vadd.f32 %v836_v44, %v296_v54 }
  0x9e   :  { %v903_v21 = vadd.f32 %v836_v44, %v273_v13  ;;  %v906_v22 = vadd.f32 %v836_v44, %v281_v14  ;;  %v1206_v23 = vmax.f32 %v933_v9, 0.0 }
  0x9f   :  { %v356_v26 = vmax.f32 %v894_v18, 0.0 }
  0xa0   :  { %v1216_v27 = vmax.f32 %v903_v21, 0.0  ;;  %v1220_v28 = vmax.f32 %v906_v22, 0.0 }
  0xa1   :  { %v426_v36 = vsel %vm370_vm2, %v356_v26, -inf }
  0xa2   :  { %v376_v32 = vsel %vm370_vm2, %v1216_v27, -inf  ;;  %v402_v33 = vsel %vm370_vm2, %v1220_v28, -inf  ;;  %v227_v34 = vpop.f32.mrf.mxu2  ;;  %v251_v35 = vpop.f32.mrf.mxu3  ;;  %v427_v51 = vmax.f32 %v425_v31, %v426_v36 }
  0xa3   :  { %v377_v38 = vmax.f32 %v375_v29, %v376_v32  ;;  %v403_v39 = vmax.f32 %v401_v30, %v402_v33  ;;  %v289_v41 = vmul.f32 %v828_v40, %v227_v34  ;;  %v182_v42 = vpop.f32.mrf.mxu0  ;;  %v206_v43 = vpop.f32.mrf.mxu1  ;;  %v297_v13 = vmul.f32 %v828_v40, %v251_v35 }
  0xa4   :  { %v274_v25 = vmul.f32 %v828_v40, %v182_v42  ;;  %v282_v29 = vmul.f32 %v828_v40, %v206_v43  ;;  %v1207_v32 = vmax.f32 %v939_v12, 0.0  ;;  %v1205_v35 = vmax.f32 %v943_v15, 0.0 }
  0xa5   :  { %v926_v46 = vadd.f32 %v836_v44, %v289_v41  ;;  %v404_v47 = vrot.slane %v403_v39, 4  ;;  %v378_v49 = vrot.slane %v377_v38, 4  ;;  %v950_v33 = vadd.f32 %v836_v44, %v297_v13 }
  0xa6   :  { %v450_v41 = vsel %vm370_vm2, %v1206_v23, -inf  ;;  %v959_v45 = vadd.f32 %v836_v44, %v274_v25  ;;  %v449_v50 = vsel %vm370_vm2, %v1207_v32, -inf }
  0xa7   :  { %v357_v55 = vmax.f32 %v926_v46, 0.0  ;;  %v405_v5 = vmax.f32 %v403_v39, %v404_v47  ;;  %v379_v8 = vmax.f32 %v377_v38, %v378_v49  ;;  %v962_v47 = vadd.f32 %v836_v44, %v282_v29 }
  0xa9   :  { %v428_v48 = vsel %vm370_vm2, %v357_v55, -inf  ;;  %v406_v10 = vrot.slane %v405_v5, 2  ;;  %v380_v11 = vrot.slane %v379_v8, 2  ;;  %v1212_v25 = vmax.f32 %v962_v47, 0.0 }
  0xaa   :  { %v429_v37 = vmax.f32 %v427_v51, %v428_v48  ;;  %v230_v6 = vpop.f32.mrf.mxu2  ;;  %v254_v14 = vpop.f32.mrf.mxu3  ;;  %v1204_v51 = vmax.f32 %v950_v33, 0.0  ;;  %v451_v48 = vmax.f32 %v449_v50, %v450_v41 }
  0xab   :  { %v185_v16 = vpop.f32.mrf.mxu0  ;;  %v209_v17 = vpop.f32.mrf.mxu1  ;;  %v407_v19 = vmax.f32 %v405_v5, %v406_v10  ;;  %v381_v20 = vmax.f32 %v379_v8, %v380_v11  ;;  %v290_v49 = vmul.f32 %v828_v40, %v230_v6  ;;  %v452_v10 = vsel %vm370_vm2, %v1205_v35, -inf }
  0xac   :  { %v430_v24 = vrot.slane %v429_v37, 4  ;;  %v275_v36 = vmul.f32 %v828_v40, %v185_v16  ;;  %v283_v42 = vmul.f32 %v828_v40, %v209_v17  ;;  %v298_v41 = vmul.f32 %v828_v40, %v254_v14 }
  0xad   :  { %v408_v30 = vrot.slane %v407_v19, 1  ;;  %v382_v31 = vrot.slane %v381_v20, 1  ;;  %v986_v29 = vadd.f32 %v836_v44, %v290_v49  ;;  %v410_v14 = vsel %vm370_vm2, %v1212_v25, -inf }
  0xae   :  { %v431_v34 = vmax.f32 %v429_v37, %v430_v24  ;;  %v975_v11 = vadd.f32 %v836_v44, %v275_v36  ;;  %v979_v16 = vadd.f32 %v836_v44, %v283_v42  ;;  %v1209_v24 = vmax.f32 %v959_v45, 0.0 }
  0xaf   :  { %v409_v38 = vmax.f32 %v407_v19, %v408_v30  ;;  %v383_v39 = vmax.f32 %v381_v20, %v382_v31  ;;  %v454_v31 = vsel %vm370_vm2, %v1204_v51, -inf }
  0xb0   :  { %v432_v43 = vrot.slane %v431_v34, 2  ;;  %v1210_v49 = vmax.f32 %v979_v16, 0.0 }
  0xb1   :  { %487 = vrot.lane.b32.xlu1 %v409_v38, %s660_s2  ;;  %483 = vrot.lane.b32.xlu0 %v383_v39, %s660_s2  ;;  %v453_v39 = vmax.f32 %v451_v48, %v452_v10 }
  0xb2   :  { %v233_v54 = vpop.f32.mrf.mxu2  ;;  %v257_v5 = vpop.f32.mrf.mxu3  ;;  %v433_v8 = vmax.f32 %v431_v34, %v432_v43  ;;  %v1208_v43 = vmax.f32 %v975_v11, 0.0 }
  0xb3   :  { %v291_v37 = vmul.f32 %v828_v40, %v233_v54  ;;  %v188_v13 = vpop.f32.mrf.mxu0  ;;  %v212_v6 = vpop.f32.mrf.mxu1  ;;  %v299_v30 = vmul.f32 %v828_v40, %v257_v5  ;;  %v455_v50 = vmax.f32 %v453_v39, %v454_v31  ;;  %v1214_v54 = vmax.f32 %v986_v29, 0.0 }
  0xb4   :  { %v276_v17 = vmul.f32 %v828_v40, %v188_v13  ;;  %v284_v19 = vmul.f32 %v828_v40, %v212_v6  ;;  %v434_v20 = vrot.slane %v433_v8, 1  ;;  %v1018_v6 = vadd.f32 %v836_v44, %v298_v41 }
  0xb5   :  { %v1000_v42 = vadd.f32 %v836_v44, %v291_v37  ;;  %v1007_v5 = vadd.f32 %v836_v44, %v299_v30  ;;  %v411_v39 = vsel %vm370_vm2, %v1210_v49, -inf }
  0xb6   :  { %v993_v34 = vadd.f32 %v836_v44, %v276_v17  ;;  %v996_v36 = vadd.f32 %v836_v44, %v284_v19  ;;  %v435_v38 = vmax.f32 %v433_v8, %v434_v20  ;;  %v384_v8 = vsel %vm370_vm2, %v1209_v24, -inf }
  0xb7   :  { %v1215_v17 = vmax.f32 %v1000_v42, 0.0 }
  0xb8   :  { %491 = vrot.lane.b32.xlu2 %v435_v38, %s660_s2  ;;  %v1211_v48 = vmax.f32 %v993_v34, 0.0  ;;  %v1213_v10 = vmax.f32 %v996_v36, 0.0  ;;  %v385_v38 = vsel %vm370_vm2, %v1208_v43, -inf }
  0xb9   :  { %v386_v24 = vmax.f32 %v384_v8, %v385_v38 }
  0xba   :  { %v236_v37 = vpop.f32.mrf.mxu2  ;;  %v260_v13 = vpop.f32.mrf.mxu3  ;;  %v387_v32 = vsel %vm370_vm2, %v1211_v48, -inf  ;;  %v1222_v48 = vmax.f32 %v1018_v6, 0.0 }
  0xbb   :  { %v292_v19 = vmul.f32 %v828_v40, %v236_v37  ;;  %v300_v20 = vmul.f32 %v828_v40, %v260_v13  ;;  %v191_v30 = vpop.f32.mrf.mxu0  ;;  %v215_v31 = vpop.f32.mrf.mxu1  ;;  %v436_v37 = vsel %vm370_vm2, %v1214_v54, -inf  ;;  %v1221_v13 = vmax.f32 %v1007_v5, 0.0 }
  0xbc   :  { %v277_v51 = vmul.f32 %v828_v40, %v191_v30  ;;  %v285_v41 = vmul.f32 %v828_v40, %v215_v31  ;;  %v413_v30 = vsel %vm370_vm2, %v1213_v10, -inf  ;;  %v456_v54 = vrot.slane %v455_v50, 4 }
  0xbd   :  { %v1036_v35 = vadd.f32 %v836_v44, %v292_v19  ;;  %v1039_v23 = vadd.f32 %v836_v44, %v300_v20  ;;  %v412_v19 = vmax.f32 %v410_v14, %v411_v39  ;;  %v437_v20 = vsel %vm370_vm2, %v1215_v17, -inf }
  0xbe   :  { %v1048_v31 = vadd.f32 %v836_v44, %v277_v51  ;;  %v1051_v43 = vadd.f32 %v836_v44, %v285_v41  ;;  %v463_v8 = vsel %vm370_vm2, %v1221_v13, -inf  ;;  %v388_v14 = vmax.f32 %v386_v24, %v387_v32 }
  0xbf   :  { %v1227_v49 = vmax.f32 %v1036_v35, 0.0  ;;  %v1224_v25 = vmax.f32 %v1039_v23, 0.0  ;;  %v414_v38 = vmax.f32 %v412_v19, %v413_v30  ;;  %v438_v39 = vmax.f32 %v436_v37, %v437_v20 }
  0xc0   :  { %v1223_v10 = vmax.f32 %v1048_v31, 0.0  ;;  %v1225_v51 = vmax.f32 %v1051_v43, 0.0  ;;  %v462_v37 = vsel %vm370_vm2, %v1222_v48, -inf }
  0xc1   :  { %v439_v41 = vsel %vm370_vm2, %v1227_v49, -inf  ;;  %v465_v30 = vsel %vm370_vm2, %v1224_v25, -inf }
  0xc2   :  { %v389_v17 = vsel %vm370_vm2, %v1223_v10, -inf  ;;  %v415_v27 = vsel %vm370_vm2, %v1225_v51, -inf  ;;  %v239_v3 = vpop.f32.mrf.mxu2  ;;  %v263_v62 = vpop.f32.mrf.mxu3 }
  0xc3   :  { %v390_v0 = vmax.f32 %v388_v14, %v389_v17  ;;  %v416_v28 = vmax.f32 %v414_v38, %v415_v27  ;;  %v293_v32 = vmul.f32 %v828_v40, %v239_v3  ;;  %v301_v24 = vmul.f32 %v828_v40, %v263_v62 }
  0xc4   :  { %v464_v27 = vmax.f32 %v462_v37, %v463_v8  ;;  %v440_v3 = vmax.f32 %v438_v39, %v439_v41  ;;  %v457_v14 = vmax.f32 %v455_v50, %v456_v54 }
  0xc5   :  { %v391_v19 = vrot.slane %v390_v0, 4  ;;  %v417_v20 = vrot.slane %v416_v28, 4  ;;  %v1082_v13 = vadd.f32 %v836_v44, %v293_v32  ;;  %v1085_v17 = vadd.f32 %v836_v44, %v301_v24 }
  0xc6   :  { %v466_v10 = vmax.f32 %v464_v27, %v465_v30  ;;  %v458_v41 = vrot.slane %v457_v14, 2 }
  0xc7   :  { %v1226_v40 = vmax.f32 %v1082_v13, 0.0  ;;  %v369_v62 = vmax.f32 %v1085_v17, 0.0  ;;  %v418_v38 = vmax.f32 %v416_v28, %v417_v20  ;;  %v392_v48 = vmax.f32 %v390_v0, %v391_v19 }
  0xc8   :  { %v1252_v17 = vmax.f32 %v943_v15, 0.0 }
  0xc9   :  { %v441_v25 = vsel %vm370_vm2, %v1226_v40, -inf  ;;  %v467_v32 = vsel %vm370_vm2, %v369_v62, -inf  ;;  %v419_v44 = vrot.slane %v418_v38, 2  ;;  %v393_v24 = vrot.slane %v392_v48, 2 }
  0xca   :  { %v442_v8 = vmax.f32 %v440_v3, %v441_v25  ;;  %v468_v39 = vmax.f32 %v466_v10, %v467_v32  ;;  %v459_v40 = vmax.f32 %v457_v14, %v458_v41 }
  0xcb   :  { %v420_v50 = vmax.f32 %v418_v38, %v419_v44  ;;  %v394_v54 = vmax.f32 %v392_v48, %v393_v24 }
  0xcc   :  { %v443_v37 = vrot.slane %v442_v8, 4  ;;  %v469_v51 = vrot.slane %v468_v39, 4  ;;  %v460_v3 = vrot.slane %v459_v40, 1 }
  0xcd   :  { %v421_v28 = vrot.slane %v420_v50, 1  ;;  %v395_v0 = vrot.slane %v394_v54, 1 }
  0xce   :  { %v444_v30 = vmax.f32 %v442_v8, %v443_v37  ;;  %v470_v19 = vmax.f32 %v468_v39, %v469_v51  ;;  %v461_v24 = vmax.f32 %v459_v40, %v460_v3  ;;  %v1244_v3 = vmax.f32 %v975_v11, 0.0 }
  0xcf   :  { %v422_v20 = vmax.f32 %v420_v50, %v421_v28  ;;  %v396_v27 = vmax.f32 %v394_v54, %v395_v0  ;;  %v1235_v50 = vmax.f32 %v986_v29, 0.0  ;;  %v1236_v54 = vmax.f32 %v1000_v42, 0.0 }
  0xd0   :  { %v445_v49 = vrot.slane %v444_v30, 2  ;;  %v471_v4 = vrot.slane %v470_v19, 2 }
  0xd1   :  { %489 = vrot.lane.b32.xlu1 %v422_v20, %s660_s2  ;;  %485 = vrot.lane.b32.xlu0 %v396_v27, %s660_s2  ;;  %v1241_v20 = vmax.f32 %v996_v36, 0.0  ;;  %v1242_v27 = vmax.f32 %v1051_v43, 0.0  ;;  %v1245_v36 = vmax.f32 %v993_v34, 0.0  ;;  %v1246_v43 = vmax.f32 %v1048_v31, 0.0 }
  0xd2   :  { %v446_v25 = vmax.f32 %v444_v30, %v445_v49  ;;  %v472_v10 = vmax.f32 %v470_v19, %v471_v4  ;;  %v1239_v30 = vmax.f32 %v962_v47, 0.0  ;;  %v1240_v19 = vmax.f32 %v979_v16, 0.0 }
  0xd4   :  { %v447_v48 = vrot.slane %v446_v25, 1  ;;  %v473_v38 = vrot.slane %v472_v10, 1 }
  0xd6   :  { %v448_v32 = vmax.f32 %v446_v25, %v447_v48  ;;  %v474_v44 = vmax.f32 %v472_v10, %v473_v38  ;;  %v1243_v10 = vmax.f32 %v959_v45, 0.0 }
  0xd8   :  { %493 = vrot.lane.b32.xlu2 %v448_v32, %s660_s2 }
  0xd9   :  { %497 = vrot.lane.b32.xlu1 %v474_v44, %s660_s2  ;;  %495 = vrot.lane.b32.xlu0 %v461_v24, %s660_s2  ;;  %v1247_v44 = vmax.f32 %v1018_v6, 0.0  ;;  %v1248_v24 = vmax.f32 %v1007_v5, 0.0 }
 0x112   :  { %v492_v51 = vpop.permute.xlu2 %491 }
 0x113   :  { %v523_v14 = vsel %vm370_vm2, %v354_v2, %v492_v51  ;;  %v524_v4 = vsel %vm370_vm2, %v355_v7, %v492_v51  ;;  %v525_v49 = vsel %vm370_vm2, %v356_v26, %v492_v51  ;;  %v526_v40 = vsel %vm370_vm2, %v357_v55, %v492_v51 }
 0x114   :  { %555 = vst [vmem:[#allocation2 + $0x80] sm:$0xff] %v523_v14  ;;  %v1229_v7 = vmax.f32 %v862_v60, 0.0  ;;  %v1230_v26 = vmax.f32 %v906_v22, 0.0  ;;  %v1231_v55 = vmax.f32 %v850_v56, 0.0  ;;  %v1233_v60 = vmax.f32 %v859_v59, 0.0 }
 0x115   :  { %556 = vst [vmem:[#allocation2 + $0x88] sm:$0xff] %v524_v4  ;;  %v1234_v22 = vmax.f32 %v903_v21, 0.0  ;;  %v1237_v59 = vmax.f32 %v1036_v35, 0.0  ;;  %v1238_v21 = vmax.f32 %v1082_v13, 0.0  ;;  %v1249_v51 = vmax.f32 %v1039_v23, 0.0 }
 0x116   :  { %557 = vst [vmem:[#allocation2 + $0x90] sm:$0xff] %v525_v49  ;;  %v1250_v4 = vmax.f32 %v939_v12, 0.0  ;;  %v1251_v23 = vmax.f32 %v933_v9, 0.0  ;;  %v1253_v12 = vmax.f32 %v950_v33, 0.0 }
 0x117   :  { %558 = vst [vmem:[#allocation2 + $0x98] sm:$0xff] %v526_v40 }
 0x123   :  { %v488_v8 = vpop.permute.xlu1 %487  ;;  %v484_v58 = vpop.permute.xlu0 %483 }
 0x124   :  { %v515_v61 = vsel %vm370_vm2, %v346_v1, %v488_v8  ;;  %v516_v2 = vsel %vm370_vm2, %v347_v63, %v488_v8  ;;  %v517_v18 = vsel %vm370_vm2, %v1229_v7, %v488_v8  ;;  %v518_v46 = vsel %vm370_vm2, %v1230_v26, %v488_v8 }
 0x125   :  { %547 = vst [vmem:[#allocation2 + $0x40] sm:$0xff] %v515_v61  ;;  %v507_v57 = vsel %vm370_vm2, %v1231_v55, %v484_v58  ;;  %v1232_v1 = vmax.f32 %v842_v52, 0.0  ;;  %v509_v63 = vsel %vm370_vm2, %v1233_v60, %v484_v58  ;;  %v510_v39 = vsel %vm370_vm2, %v1234_v22, %v484_v58 }
 0x126   :  { %548 = vst [vmem:[#allocation2 + $0x48] sm:$0xff] %v516_v2 }
 0x127   :  { %549 = vst [vmem:[#allocation2 + $0x50] sm:$0xff] %v517_v18  ;;  %v508_v53 = vsel %vm370_vm2, %v1232_v1, %v484_v58 }
 0x128   :  { %550 = vst [vmem:[#allocation2 + $0x58] sm:$0xff] %v518_v46 }
 0x129   :  { %539 = vst [vmem:[#allocation2] sm:$0xff] %v507_v57 }
 0x12a   :  { %540 = vst [vmem:[#allocation2 + $0x8] sm:$0xff] %v508_v53 }
 0x12b   :  { %541 = vst [vmem:[#allocation2 + $0x10] sm:$0xff] %v509_v63 }
 0x12c   :  { %542 = vst [vmem:[#allocation2 + $0x18] sm:$0xff] %v510_v39 }
 0x132   :  { %v494_v56 = vpop.permute.xlu2 %493 }
 0x133   :  { %v527_v52 = vsel %vm370_vm2, %v1235_v50, %v494_v56  ;;  %v528_v41 = vsel %vm370_vm2, %v1236_v54, %v494_v56  ;;  %v529_v37 = vsel %vm370_vm2, %v1237_v59, %v494_v56  ;;  %v530_v28 = vsel %vm370_vm2, %v1238_v21, %v494_v56 }
 0x134   :  { %559 = vst [vmem:[#allocation2 + $0xa0] sm:$0xff] %v527_v52 }
 0x135   :  { %560 = vst [vmem:[#allocation2 + $0xa8] sm:$0xff] %v528_v41 }
 0x136   :  { %561 = vst [vmem:[#allocation2 + $0xb0] sm:$0xff] %v529_v37 }
 0x137   :  { %562 = vst [vmem:[#allocation2 + $0xb8] sm:$0xff] %v530_v28 }
 0x143   :  { %v490_v0 = vpop.permute.xlu1 %489  ;;  %v486_v29 = vpop.permute.xlu0 %485 }
 0x144   :  { %v519_v42 = vsel %vm370_vm2, %v1239_v30, %v490_v0  ;;  %v520_v35 = vsel %vm370_vm2, %v1240_v19, %v490_v0  ;;  %v521_v13 = vsel %vm370_vm2, %v1241_v20, %v490_v0  ;;  %v522_v25 = vsel %vm370_vm2, %v1242_v27, %v490_v0 }
 0x145   :  { %551 = vst [vmem:[#allocation2 + $0x60] sm:$0xff] %v519_v42  ;;  %v511_v47 = vsel %vm370_vm2, %v1243_v10, %v486_v29  ;;  %v512_v16 = vsel %vm370_vm2, %v1244_v3, %v486_v29  ;;  %v513_v48 = vsel %vm370_vm2, %v1245_v36, %v486_v29  ;;  %v514_v38 = vsel %vm370_vm2, %v1246_v43, %v486_v29 }
 0x146   :  { %552 = vst [vmem:[#allocation2 + $0x68] sm:$0xff] %v520_v35 }
 0x147   :  { %553 = vst [vmem:[#allocation2 + $0x70] sm:$0xff] %v521_v13 }
 0x148   :  { %554 = vst [vmem:[#allocation2 + $0x78] sm:$0xff] %v522_v25 }
 0x149   :  { %543 = vst [vmem:[#allocation2 + $0x20] sm:$0xff] %v511_v47 }
 0x14a   :  { %544 = vst [vmem:[#allocation2 + $0x28] sm:$0xff] %v512_v16 }
 0x14b   :  { %545 = vst [vmem:[#allocation2 + $0x30] sm:$0xff] %v513_v48  ;;  %v498_v45 = vpop.permute.xlu1 %497  ;;  %v496_v32 = vpop.permute.xlu0 %495 }
 0x14c   :  { %546 = vst [vmem:[#allocation2 + $0x38] sm:$0xff] %v514_v38  ;;  %v535_v11 = vsel %vm370_vm2, %v1247_v44, %v498_v45  ;;  %v536_v34 = vsel %vm370_vm2, %v1248_v24, %v498_v45  ;;  %v537_v31 = vsel %vm370_vm2, %v1249_v51, %v498_v45  ;;  %v538_v14 = vsel %vm370_vm2, %v369_v62, %v498_v45 }
 0x14d   :  { %567 = vst [vmem:[#allocation2 + $0xe0] sm:$0xff] %v535_v11  ;;  %v531_v6 = vsel %vm370_vm2, %v1250_v4, %v496_v32  ;;  %v532_v5 = vsel %vm370_vm2, %v1251_v23, %v496_v32  ;;  %v533_v62 = vsel %vm370_vm2, %v1252_v17, %v496_v32  ;;  %v534_v49 = vsel %vm370_vm2, %v1253_v12, %v496_v32 }
 0x14e   :  { %568 = vst [vmem:[#allocation2 + $0xe8] sm:$0xff] %v536_v34 }
 0x14f   :  { %569 = vst [vmem:[#allocation2 + $0xf0] sm:$0xff] %v537_v31 }
 0x150   :  { %570 = vst [vmem:[#allocation2 + $0xf8] sm:$0xff] %v538_v14 }
 0x151   :  { %563 = vst [vmem:[#allocation2 + $0xc0] sm:$0xff] %v531_v6 }
 0x152   :  { %564 = vst [vmem:[#allocation2 + $0xc8] sm:$0xff] %v532_v5 }
 0x153   :  { %565 = vst [vmem:[#allocation2 + $0xd0] sm:$0xff] %v533_v62 }
 0x154   :  { %566 = vst [vmem:[#allocation2 + $0xd8] sm:$0xff] %v534_v49 }
 0x155   :  { %583 = dma.vmem_to_hbm [thread:$0]  %s576_s5, 4096, %s578_s8, [#allocation3], %s662_s4, %s662_s4, %s663_s9  }
 0x156   :  { %658 = dma.done.wait [#allocation3], 4096  }
 0x157   :  { %659 = vsyncadd [#allocation3], 4294963200 }
 0x158   :  { %588 = vsyncpa [#allocation3], 1 }

</bundles_post_ra>
